<compile_context>
chip_gen: v5e
topology: v5e:2x2
jax: 0.10.0
libtpu: 0.0.40
codegen_flags: <defaults>
</compile_context>

<pallas_src>
import jax
import jax.numpy as jnp
from jax.experimental import pallas as pl
from jax.experimental.pallas import tpu as pltpu

_MiB = 1024 * 1024
# Per-grid-step working-set budget (double-buffered in + out + f32 temps).
_BUDGET = 48 * _MiB


def _round_up(x, m):
    return ((x + m - 1) // m) * m


def _sublane(dtype):
    itemsize = jnp.dtype(dtype).itemsize
    return max(8, 32 // max(itemsize, 1))  # 8 f32, 16 bf16, 32 int8/fp8


def _compiler_params(dim_semantics, footprint_bytes):
    # Derive the scoped-VMEM limit from the actual footprint (+ headroom),
    # clamped to a range that is legal on v5e / v6e / v7x.
    limit = int(footprint_bytes) + 2 * _MiB
    limit = max(limit, 32 * _MiB)
    limit = min(limit, 56 * _MiB)
    return pltpu.CompilerParams(
        dimension_semantics=dim_semantics,
        vmem_limit_bytes=limit,
    )


# ----------------------------------------------------------------------------
# Kernels (HBM-bound elementwise; sigmoid computed in f32, one cast at store).
# NOTE: ragged edge blocks push padded rows through exp(); the masked edge
# store discards them, so numerics are unaffected.
# ----------------------------------------------------------------------------
def _glu_kernel_split(a_ref, g_ref, o_ref):
    # a/g/o are identically shaped, aligned tiles ("out" half and "gate" half).
    sig = jax.nn.sigmoid(g_ref[...].astype(jnp.float32))
    o_ref[...] = (a_ref[...] * sig).astype(o_ref.dtype)
    # TODO(synk): on v7x, exp + pl.reciprocal(approx=True) would move the
    # divide onto the EUP; not used so results stay f32-exact vs the reference.


def _glu_kernel_fused_last(x_ref, o_ref):
    # x_ref: (tile_m, H); o_ref: (tile_m, Hh). Split on the last (lane) axis.
    hh = o_ref.shape[-1]
    sig = jax.nn.sigmoid(x_ref[:, hh:].astype(jnp.float32))
    o_ref[...] = (x_ref[:, :hh] * sig).astype(o_ref.dtype)


def _glu_kernel_fused_mid(x_ref, o_ref):
    # x_ref: (tile_lead, D, tile_trail); o_ref: (tile_lead, Dh, tile_trail).
    dh = o_ref.shape[1]
    sig = jax.nn.sigmoid(x_ref[:, dh:, :].astype(jnp.float32))
    o_ref[...] = (x_ref[:, :dh, :] * sig).astype(o_ref.dtype)


# ----------------------------------------------------------------------------
# Last-axis split: 2-D (M, H) slab, lane-aligned halves where possible.
# ----------------------------------------------------------------------------
def _glu_last_axis(x2d, tm=None):
    M, H = x2d.shape
    Hh = H // 2
    dtype = x2d.dtype
    itemsize = jnp.dtype(dtype).itemsize
    sublane = _sublane(dtype)

    # Bytes per output row per step: double-buffered input (H) + output (Hh)
    # plus worst-case f32 intermediates (also covers any fallback relayout copy).
    per_row = 2 * (H + Hh) * itemsize + 3 * Hh * 4

    if tm is not None:
        tile_m = max(1, int(tm))
    else:
        tile_m = max(sublane, _BUDGET // per_row)
        tile_m = min(tile_m, 8192)  # raised row cap
        if M > sublane:
            # Keep the single parallel grid axis >= 2 steps (v7x megacore).
            tile_m = min(tile_m, _round_up(-(-M // 2), sublane))
    tile_m = min(tile_m, _round_up(M, sublane))
    tile_m = max(sublane, (tile_m // sublane) * sublane)

    grid = (pl.cdiv(M, tile_m),)
    cparams = _compiler_params(("parallel",), tile_m * per_row)

    if Hh % 128 == 0 and Hh * itemsize >= 1024:
        # Wide, lane-aligned halves: two half BlockSpecs over the same slab.
        return pl.pallas_call(
            _glu_kernel_split,
            out_shape=jax.ShapeDtypeStruct((M, Hh), dtype),
            grid_spec=pltpu.PrefetchScalarGridSpec(
                num_scalar_prefetch=0,
                grid=grid,
                in_specs=[
                    pl.BlockSpec((tile_m, Hh), lambda i: (i, 0)),   # "out" half
                    pl.BlockSpec((tile_m, Hh), lambda i: (i, 1)),   # "gate" half
                ],
                out_specs=pl.BlockSpec((tile_m, Hh), lambda i: (i, 0)),
            ),
            compiler_params=cparams,
        )(x2d, x2d)

    # Narrow or non-128-aligned Hh: single full-width block (last dim equals
    # the array dim -> always legal); in-kernel lane slice.  When Hh % 128 == 0
    # the slice is layout-free and this gives one long DMA stream per row.
    return pl.pallas_call(
        _glu_kernel_fused_last,
        out_shape=jax.ShapeDtypeStruct((M, Hh), dtype),
        grid_spec=pltpu.PrefetchScalarGridSpec(
            num_scalar_prefetch=0,
            grid=grid,
            in_specs=[pl.BlockSpec((tile_m, H), lambda i: (i, 0))],
            out_specs=pl.BlockSpec((tile_m, Hh), lambda i: (i, 0)),
        ),
        compiler_params=cparams,
    )(x2d)


# ----------------------------------------------------------------------------
# Middle-axis split: 3-D (lead, D, trail) slab, no transpose.
# ----------------------------------------------------------------------------
def _glu_mid_axis(x3, tm=None):
    lead, D, trail = x3.shape
    Dh = D // 2
    dtype = x3.dtype
    itemsize = jnp.dtype(dtype).itemsize
    sublane = _sublane(dtype)

    def _bytes(t_trail):
        # Double-buffered input + output plus f32 intermediates, per lead row.
        return 2 * (D + Dh) * t_trail * itemsize + 3 * Dh * t_trail * 4

    if _bytes(trail) <= _BUDGET or trail % 128 != 0:
        tile_trail = trail  # full trailing extent (always a legal block dim)
        # TODO(synk): a huge, non-128-aligned trail cannot be tiled here; pad
        # trail (or split the aligned prefix) in the wrapper for such shapes.
    else:
        tile_trail = max(128, (_BUDGET // _bytes(128)) * 128)
        tile_trail = min(tile_trail, trail)

    row_bytes = _bytes(tile_trail)
    if tm is not None:
        tile_lead = max(1, int(tm))
    else:
        tile_lead = max(1, _BUDGET // row_bytes)
        tile_lead = min(tile_lead, 8192)
        if lead >= 2:
            tile_lead = min(tile_lead, -(-lead // 2))  # grid >= 2 (v7x megacore)
    tile_lead = min(tile_lead, lead)

    grid = (pl.cdiv(lead, tile_lead), pl.cdiv(trail, tile_trail))
    cparams = _compiler_params(("parallel", "parallel"), tile_lead * row_bytes)
    out_shape = jax.ShapeDtypeStruct((lead, Dh, trail), dtype)
    out_spec = pl.BlockSpec((tile_lead, Dh, tile_trail), lambda i, j: (i, 0, j))

    if Dh % sublane == 0:
        # Sublane-aligned halves: two BlockSpecs over the same array, block
        # index 0 vs 1 along the split axis -> no in-kernel relayout.
        return pl.pallas_call(
            _glu_kernel_split,
            out_shape=out_shape,
            grid_spec=pltpu.PrefetchScalarGridSpec(
                num_scalar_prefetch=0,
                grid=grid,
                in_specs=[
                    pl.BlockSpec((tile_lead, Dh, tile_trail), lambda i, j: (i, 0, j)),
                    pl.BlockSpec((tile_lead, Dh, tile_trail), lambda i, j: (i, 1, j)),
                ],
                out_specs=out_spec,
            ),
            compiler_params=cparams,
        )(x3, x3)

    # Dh not sublane-aligned: take the full split axis (legal: equals the array
    # dim) and slice on sublanes inside the kernel.
    return pl.pallas_call(
        _glu_kernel_fused_mid,
        out_shape=out_shape,
        grid_spec=pltpu.PrefetchScalarGridSpec(
            num_scalar_prefetch=0,
            grid=grid,
            in_specs=[pl.BlockSpec((tile_lead, D, tile_trail), lambda i, j: (i, 0, j))],
            out_specs=out_spec,
        ),
        compiler_params=cparams,
    )(x3)


# ----------------------------------------------------------------------------
# Public wrapper: matches torch.nn.GLU-style semantics of the module.
# ----------------------------------------------------------------------------
def glu_pallas(x, dim=-1, *, tm=None):
    """out, gate = x.chunk(2, dim); return out * sigmoid(gate)."""
    ndim = x.ndim
    dim = dim % ndim
    D = x.shape[dim]
    assert D % 2 == 0, "GLU requires an even size along the split dimension"
    Dh = D // 2

    lead = 1
    for s in x.shape[:dim]:
        lead *= s
    trail = 1
    for s in x.shape[dim + 1:]:
        trail *= s
    out_shape = x.shape[:dim] + (Dh,) + x.shape[dim + 1:]
    itemsize = jnp.dtype(x.dtype).itemsize

    if trail == 1:
        # Split axis is (effectively) the last axis: lane-aligned 2-D path.
        out2d = _glu_last_axis(x.reshape(lead, D), tm=tm)
        return out2d.reshape(out_shape)

    if trail * itemsize >= 512:
        # Middle-axis split with NO transpose (the big win for dim != last).
        out3d = _glu_mid_axis(x.reshape(lead, D, trail), tm=tm)
        return out3d.reshape(out_shape)

    # Tiny trailing extent: lane-sparse blocks would waste most of each HBM
    # burst, so pay one transpose pass and use the lane-aligned path.
    xt = jnp.moveaxis(x.reshape(lead, D, trail), 1, -1)       # (lead, trail, D)
    out2d = _glu_last_axis(xt.reshape(lead * trail, D), tm=tm)
    out = jnp.moveaxis(out2d.reshape(lead, trail, Dh), -1, 1)
    return out.reshape(out_shape)


def _glu_ref(x, dim):
    a, g = jnp.split(x, 2, axis=dim)
    return a * jax.nn.sigmoid(g)


if __name__ == "__main__":
    key = jax.random.PRNGKey(0)
    keys = jax.random.split(key, 6)

    def check(x, dim, atol=1e-5, rtol=1e-5):
        y = jax.block_until_ready(glu_pallas(x, dim=dim))
        y_ref = _glu_ref(x, dim)
        assert y.shape == y_ref.shape, (y.shape, y_ref.shape)
        assert y.dtype == y_ref.dtype, (y.dtype, y_ref.dtype)
        assert jnp.allclose(y.astype(jnp.float32), y_ref.astype(jnp.float32),
                            atol=atol, rtol=rtol), (dim, x.shape, str(x.dtype))

    # 1) dim=last, Hh=128 f32: single full-width DMA stream, 128-aligned slice.
    check(jax.random.normal(keys[0], (2, 8, 256), jnp.float32), -1)
    # 2) dim=last, Hh=512 f32: dual lane-aligned half BlockSpecs over one slab.
    check(jax.random.normal(keys[1], (2, 8, 1024), jnp.float32), -1)
    # 3) dim=1 (middle axis), Dh=4: transpose-free full-D block + sublane slice.
    check(jax.random.normal(keys[2], (2, 8, 256), jnp.float32), 1)
    # 4) dim=1 (middle axis), Dh=8: transpose-free dual sublane-aligned halves.
    check(jax.random.normal(keys[3], (2, 16, 256), jnp.float32), 1)
    # 5) dim=1 with a tiny trailing extent: transpose fallback path.
    check(jax.random.normal(keys[4], (2, 64, 8), jnp.float32), 1)
    # 6) bf16, dim=1, Dh=16 (matches bf16 sublane packing): split path, bf16 I/O.
    check(jax.random.normal(keys[5], (2, 32, 256), jnp.float32).astype(jnp.bfloat16),
          1, atol=2e-2, rtol=2e-2)

    print("KERNEL_OK")
</pallas_src>

<mosaic_0001>
module attributes {stable_mosaic.version = 11 : i64} {
  func.func @_glu_kernel_fused_last(%arg0: i32, %arg1: memref<8x256xf32, #tpu.memory_space<vmem>>, %arg2: memref<8x128xf32, #tpu.memory_space<vmem>>) attributes {dimension_semantics = [#tpu.dimension_semantics<parallel>], iteration_bounds = array<i64: 2>, scalar_prefetch = 0 : i64, scratch_operands = 0 : i64, tpu.core_type = #tpu.core_type<tc>, window_params = [{transform_indices = @transform_0, window_bounds = array<i64: 8, 256>}, {transform_indices = @transform_1, window_bounds = array<i64: 8, 128>}]} {
    %c0 = arith.constant 0 : index
    %c128 = arith.constant 128 : index
    %0 = vector.load %arg1[%c0, %c128] : memref<8x256xf32, #tpu.memory_space<vmem>>, vector<8x128xf32>
    %1 = arith.negf %0 : vector<8x128xf32>
    %2 = math.exp %1 : vector<8x128xf32>
    %cst = arith.constant 1.000000e+00 : f32
    %3 = vector.broadcast %cst : f32 to vector<8x128xf32>
    %4 = arith.addf %3, %2 : vector<8x128xf32>
    %5 = arith.divf %3, %4 : vector<8x128xf32>
    %c0_0 = arith.constant 0 : index
    %c0_1 = arith.constant 0 : index
    %6 = vector.load %arg1[%c0_0, %c0_1] : memref<8x256xf32, #tpu.memory_space<vmem>>, vector<8x128xf32>
    %7 = arith.mulf %6, %5 : vector<8x128xf32>
    %c0_2 = arith.constant 0 : index
    %c0_3 = arith.constant 0 : index
    %8 = vector.load %arg2[%c0_2, %c0_3] : memref<8x128xf32, #tpu.memory_space<vmem>>, vector<8x128xf32>
    tpu.vector_store %arg2[%c0_2, %c0_3], %7 {strides = array<i32>} : memref<8x128xf32, #tpu.memory_space<vmem>>, vector<8x128xf32>,
    return
  }
  func.func @transform_0(%arg0: i32) -> (i32, i32) {
    %c0_i32 = arith.constant 0 : i32
    %c0_i32_0 = arith.constant 0 : i32
    return %arg0, %c0_i32 : i32, i32
  }
  func.func @transform_1(%arg0: i32) -> (i32, i32) {
    %c0_i32 = arith.constant 0 : i32
    %c0_i32_0 = arith.constant 0 : i32
    return %arg0, %c0_i32 : i32, i32
  }
}

</mosaic_0001>

<bundles_post_ra>
// kernel: tpu_custom_call.1
= control target key start
LH: loop header
LB: loop body
LE: loop exit
PB: predicated region body
PF: predicated region fallthrough
CT: control target
= control target key end

     0   :  { %6 = vsyncpa [#allocation3], 0  ;;  %s545_s0 = inlined_call_operand.hbm [shape: f32[16,256], index: 0, kind: input, shape index: {}]   ;;  %s546_s1 = inlined_call_operand.hbm [shape: f32[16,128], index: 1, kind: output, shape index: {}]  }
   0x1   :  { %8 = vsyncpa [#allocation3 + $0x1], 0 }
   0x2   :  { %9 = vsyncpa [#allocation4], 0 }
   0x3   :  { %11 = vsyncpa [#allocation4 + $0x1], 0  ;;  %s417_s6 = smov 0   ;;  %s419_s7 = smov 0  }
   0x4   :  { %s421_s8 = smov 0   ;;  %s423_s9 = smov 0  }
   0x5 LB: > { %s438_s10 = sadd.s32 4294967295, %s405_s9   ;;  %s244_s11 = sadd.s32 4294967294, %s405_s9   ;;  %s405_s9 = sphi %s423_s9, %s556_s9   ;;  %s401_s8 = sphi %s421_s8, %s555_s8   ;;  %s397_s7 = sphi %s419_s7, %s554_s7   ;;  %s393_s6 = sphi %s417_s6, %s553_s6  }
   0x6   : > { %s442_s12 = sadd.s32 1, %s405_s9   ;;  %s24_s13 = sadd.s32 1, %s401_s8 }
   0x7   : > { %s21_s14 = ssub.s32 %s405_s9, %s442_s12  ;;  %p31_p0 = scmp.ne.s32.totalorder %s401_s8, %s397_s7 }
   0x8   : > { %p22_p1 = scmp.eq.s32.totalorder %s21_s14, 0  ;;  %p32_p2 = scmp.eq.s32.totalorder %s405_s9, 0 }
   0x9   : > { %p37_p3 = scmp.ne.s32.totalorder %s397_s7, %s393_s6  ;;  %p38_p4 = scmp.eq.s32.totalorder %s438_s10, 0 }
   0xa   : > { %s454_s15 = scalar_select %p22_p1, %s401_s8, %s24_s13  }
   0xb   : > { %p456_p5 = por %p32_p2, %p31_p0  ;;  %p460_p6 = por %p38_p4, %p37_p3 }
   0xc   : > { %p61_p7 = scmp.eq.s32.totalorder %s438_s10, 1  ;;  %p67_p8 = scmp.eq.s32.totalorder %s244_s11, 1 }
   0xd   : > { %p271_p10 = scmp.lt.s32.totalorder %s405_s9, 2  ;;  %s87_s20 = sand.u32 1, %s401_s8  }
   0xe   : > { %p467_p11 = por %p61_p7, %p31_p0  ;;  %p471_p12 = por %p67_p8, %p37_p3 }
   0xf   : > { %s258_s21 = sshll.u32 %s405_s9, 4  ;;  %s247_s22 = sshll.u32 %s87_s20, 4 }
  0x10   : > { %s96_s25 = scalar_lea.hbm %s545_s0, %s258_s21  ;;  %s91_s27 = scalar_lea.vmem [#allocation2], %s247_s22 }
  0x11   : > { %s98_s26 = sshll.u32 %s96_s25, 4  ;;  %s100_s28 = sshll.u32 %s91_s27, 4  ;;  %s99_s26 = int_to_ptr.hbm [resolvable:$true] %s98_s26  ;;  %s101_s28 = int_to_ptr.vmem [resolvable:$true] %s100_s28 }
  0x12   : > { %p482_p13 = pnand %p271_p10, %p456_p5  ;;  %p250_p0 = scmp.ge.s32.totalorder %s405_s9, 1 }
  0x13   : > { %p105_p1 = scmp.lt.s32.totalorder %s405_s9, 3  ;;  %s88_s30 = scalar_lea.sflag [#allocation3], %s87_s20 }
  0x14   : > { %s309_s2 = sshra.s32 %s99_s26, 4  ;;  %p313_p3 = pneg %p482_p13  ;;  %s310_s2 = int_to_ptr.hbm [resolvable:$true] %s309_s2 }
  0x15   : > { %s311_s3 = scalar_lea.hbm %s310_s2, 16  ;;  %s316_s11 = scalar_lea.hbm %s545_s0, 32 }
  0x16   : > { %p312_p2 = scmp.ne.s32.totalorder %s310_s2, %s311_s3  ;;  %p317_p5 = scmp.lt.s32.totalorder %s310_s2, %s545_s0 }
  0x17   : > { %p318_p8 = scmp.lt.s32.totalorder %s316_s11, %s311_s3 }
  0x18   : > { %p314_p4 = pnand %p313_p3, %p312_p2 }
  0x19   : > { %p319_p10 = por %p318_p8, %p317_p5 }
  0x1a   : > { %p315_p7 = pneg %p314_p4 }
  0x1c   : > { %p320_p9 = pnand %p319_p10, %p315_p7 }
  0x1e   : > { %323 = shalt.err (!%p320_p9)
}
  0x1f   : > { %266 = dma.hbm_to_vmem [thread:$0]  (!%p482_p13), %s99_s26, 256, %s101_s28, %s88_s30  }
  0x20   : > { %p106_p2 = pnand %p250_p0, %p105_p1 }
  0x21   : > { %s503_s16 = sand.u32 (!%p106_p2), 1, %s397_s7  }
  0x22   : > { %109 = sbr.rel (%p106_p2) target bundleno = 74 (0x4a), region = 24  ;;  %s251_s20 = sshll.u32 (!%p106_p2), %s503_s16, 4 }
  0x23   : > { %s112_s21 = scalar_lea.sflag (!%p106_p2), [#allocation3], %s503_s16  ;;  %s115_s22 = scalar_lea.vmem (!%p106_p2), [#allocation2], %s251_s20 }
  0x27   : > { %384 = dma.done.wait (%p460_p6), %s112_s21, 256  }
  0x28   : > { %386 = vsyncadd (%p460_p6), %s112_s21, 4294967040  ;;  %v135_v0 = vld [vmem:[%s115_s22 + $0x8] sm:$0xff]  ;;  %s252_s23 = sshll.u32 %s503_s16, 3  ;;  %s255_s24 = sshll.u32 %s438_s10, 3  ;;  %v155_v12 = vld [vmem:[%s115_s22] sm:$0xff] }
  0x29   : > { %v253_v1 = vmul.f32 -1.442695, %v135_v0  ;;  %s169_s26 = scalar_lea.hbm %s546_s1, %s255_s24  ;;  %s134_s27 = scalar_lea.vmem [#allocation5], %s252_s23 }
  0x2a   : > { %s171_s28 = sshll.u32 %s134_s27, 4  ;;  %s173_s29 = sshll.u32 %s169_s26, 4  ;;  %s172_s28 = int_to_ptr.vmem [resolvable:$true] %s171_s28  ;;  %s174_s29 = int_to_ptr.hbm [resolvable:$true] %s173_s29 }
  0x2b   : > { %305 = vpow2.f32 %v253_v1  ;;  %s159_s10 = scalar_lea.sflag [#allocation4], %s503_s16  ;;  %s353_s30 = sshra.s32 %s174_s29, 4  ;;  %s354_s30 = int_to_ptr.hbm [resolvable:$true] %s353_s30 }
  0x2c   : > { %s355_s2 = scalar_lea.hbm %s354_s30, 8  ;;  %s359_s5 = scalar_lea.hbm %s546_s1, 16 }
  0x2d   : > { %p356_p6 = scmp.ne.s32.totalorder %s354_s30, %s355_s2  ;;  %p360_p0 = scmp.lt.s32.totalorder %s354_s30, %s546_s1 }
  0x2e   : > { %p361_p1 = scmp.lt.s32.totalorder %s359_s5, %s355_s2 }
  0x2f   : > { %p357_p9 = pnand %p356_p6, %p467_p11 }
  0x30   : > { %p362_p3 = por %p361_p1, %p360_p0 }
  0x31   : > { %v306_v2 = vpop.eup %305  ;;  %p358_p13 = pneg %p357_p9 }
  0x32   : > { %v139_v3 = vadd.f32 1.0, %v306_v2 }
  0x33   : > { %p363_p4 = pnand %p362_p3, %p358_p13 }
  0x34   : > { %307 = vrcp.f32 %v139_v3  ;;  %v151_v6 = vand.u32 2147483648, %v139_v3  ;;  %vm145_vm0 = vweird.f32 %v139_v3  ;;  %v149_v8 = vand.u32 2147483647, %v139_v3 }
  0x36   : > { %v152_v10 = vor.u32 1.1754944e-38, %v151_v6  ;;  %vm150_vm3 = vcmp.eq.f32.partialorder %v149_v8, 8.507059e+37 }
  0x3a   : > { %v308_v4 = vpop.eup %307 }
  0x3b   : > { %v141_v5 = vmul.f32 %v308_v4, %v139_v3  ;;  %vm146_vm1 = vweird.f32 %v308_v4 }
  0x3c   : > { %vm147_vm2 = vmor %vm145_vm0, %vm146_vm1 }
  0x3d   : > { %v142_v7 = vsub.f32 1.0, %v141_v5 }
  0x3f   : > { %v143_v9 = vmul.f32 %v308_v4, %v142_v7 }
  0x41   : > { %v144_v11 = vadd.f32 %v308_v4, %v143_v9 }
  0x43   : > { %v148_v13 = vsel %vm147_vm2, %v308_v4, %v144_v11 }
  0x44   : > { %v153_v14 = vsel %vm150_vm3, %v152_v10, %v148_v13 }
  0x45   : > { %v156_v15 = vmul.f32 %v155_v12, %v153_v14 }
  0x47   : > { %157 = vst [vmem:[%s134_s27] sm:$0xff] %v156_v15 }
  0x48   : > { %366 = shalt.err (!%p363_p4)
}
  0x49   : > { %261 = dma.vmem_to_hbm [thread:$0]  (%p467_p11), %s172_s28, 128, %s174_s29, %s159_s10  }
  0x4a PF: > { %s185_s14 = sand.u32 1, %s393_s6   ;;  %p552_p7 = scmp.ge.s32.totalorder %s405_s9, 2 }
  0x4b   : > { %s186_s16 = scalar_lea.sflag [#allocation4], %s185_s14 }
  0x4c   : > { %p268_p5 = pnand %p552_p7, %p471_p12 }
  0x4e   : > { %p269_p8 = pneg %p268_p5 }
  0x50   : > { %388 = dma.done.wait (%p269_p8), %s186_s16, 128  }
  0x51   : > { %390 = vsyncadd (%p269_p8), %s186_s16, 4294967168  ;;  %p14_p10 = scmp.ge.s32.totalorder %s442_s12, 4   ;;  %s553_s6 = smov %s397_s7 }
  0x52   : > { %s554_s7 = smov %s401_s8  ;;  %s555_s8 = smov %s454_s15 }
  0x53   : > { %s556_s9 = smov %s442_s12  ;;  %16 = sbr.rel (!%p14_p10) target bundleno = 5 (0x5), region = 69 }
  0x58   :  { %192 = vsyncpa [#allocation3], 1 }
  0x59   :  { %194 = vsyncpa [#allocation3 + $0x1], 1 }
  0x5a   :  { %195 = vsyncpa [#allocation4], 1 }
  0x5b   :  { %197 = vsyncpa [#allocation4 + $0x1], 1 }

</bundles_post_ra>
